<compile_context>
chip_gen: v7x
topology: tpu7x:2x2x1
jax: 0.10.0
libtpu: 0.0.40
codegen_flags: <defaults>
</compile_context>

<pallas_src>
import jax
import jax.numpy as jnp
from jax.experimental import pallas as pl
from jax.experimental.pallas import tpu as pltpu


def _round_up(x, m):
    return ((x + m - 1) // m) * m


def _tc_has_native_bf16():
    """v6e/v7x TensorCores have bf16 VALUs; v2-v5 do not (bf16 epilogue would
    be emulated there, so keep f32)."""
    try:
        kind = jax.devices()[0].device_kind.lower()
    except Exception:
        return True
    return not any(tag in kind for tag in ("v2", "v3", "v4", "v5"))


def _pick_batch_tile(B):
    # Small batches: one full-batch block (block == full dim is always legal).
    if B <= 256:
        return B
    # Larger batches: >= 2 grid steps (so both v7x TCs get work via the
    # "parallel" axis), tile a multiple of 256 (full MXU M cadence on the
    # 256-wide v6e/v7x MXUs, clean 2x128 passes on v5e), capped at 4096 rows
    # so the (tb, 256) intermediates stay well inside every generation's
    # scoped-VMEM default.
    return max(256, min(4096, _round_up(pl.cdiv(B, 2), 256)))


def _make_policy_kernel(act_dim, epi_dtype):
    def kernel(x_ref, w1_ref, b1_ref, w2_ref, b2_ref, w3_ref, b3_ref, out_ref):
        # States arrive in their HBM dtype (f32); cast to the MXU input dtype
        # in-kernel so the wrapper stays a single pallas_call.
        x = x_ref[...].astype(w1_ref.dtype)
        # Layers 1-2: MXU matmuls; bias-add + ReLU epilogue in epi_dtype
        # (bf16 on v6e/v7x, f32 on v5e / when use_bf16=False).
        h1 = jnp.dot(x, w1_ref[...], preferred_element_type=epi_dtype)
        h1 = jnp.maximum(h1 + b1_ref[...], 0.0)
        h2 = jnp.dot(h1.astype(w2_ref.dtype), w2_ref[...],
                     preferred_element_type=epi_dtype)
        h2 = jnp.maximum(h2 + b2_ref[...], 0.0)
        # Mean head only (log_std half dropped at prepare time; W3 zero-padded
        # to a lane-dense width so the matmul is unmasked).  f32 accumulate,
        # then slice to the act_dim real columns before the f32 bias + tanh
        # epilogue and the small (B, act_dim) store.
        o = jnp.dot(h2.astype(w3_ref.dtype), w3_ref[...],
                    preferred_element_type=jnp.float32)
        means = o[:, :act_dim] + b3_ref[...]
        out_ref[...] = jnp.tanh(means).astype(out_ref.dtype)
    return kernel


def prepare_params(params, *, use_bf16=True, bf16_epilogue=None):
    """One-time parameter preprocessing (hoisted out of the per-call forward).

    Drops the unused log_std half of the third layer (forward only needs
    chunk(2)[0]), zero-pads the mean head to 128 lanes for an unmasked last
    matmul, and performs all dtype casts once.  Call once per set of weights;
    the per-call forward is then a single pallas_call with no extra XLA ops.
    """
    w1, b1, w2, b2, w3, b3 = params
    h1_dim = w1.shape[1]
    h2_dim = w2.shape[1]
    act_dim = w3.shape[1] // 2
    if bf16_epilogue is None:
        bf16_epilogue = use_bf16 and _tc_has_native_bf16()
    compute_dtype = jnp.bfloat16 if use_bf16 else jnp.float32
    epi_dtype = jnp.bfloat16 if (use_bf16 and bf16_epilogue) else jnp.float32

    b1 = jnp.asarray(b1).reshape(1, h1_dim)
    b2 = jnp.asarray(b2).reshape(1, h2_dim)
    b3 = jnp.asarray(b3).reshape(1, -1)

    # Mean head, zero-padded to a lane-dense width (padding never reaches HBM:
    # the kernel slices it off before the store).
    w3_cols = max(128, _round_up(act_dim, 128))
    w3m = jnp.zeros((h2_dim, w3_cols), jnp.float32).at[:, :act_dim].set(
        jnp.asarray(w3, jnp.float32)[:, :act_dim])

    return dict(
        w1=jnp.asarray(w1, compute_dtype),
        b1=b1.astype(epi_dtype),
        w2=jnp.asarray(w2, compute_dtype),
        b2=b2.astype(epi_dtype),
        w3=w3m.astype(compute_dtype),
        b3=b3[:, :act_dim].astype(jnp.float32),
        act_dim=int(act_dim),
        epi_dtype=epi_dtype,
        out_dtype=jnp.bfloat16 if use_bf16 else jnp.float32,
    )


def state_dependent_policy_forward(states, prepped, *, batch_tile=None, out_dtype=None):
    """tanh(mean head of the MLP)  ==  StateDependentPolicy.forward(states)."""
    B, state_dim = states.shape
    w1, b1, w2, b2, w3, b3 = (prepped[k] for k in ("w1", "b1", "w2", "b2", "w3", "b3"))
    act_dim = prepped["act_dim"]
    epi_dtype = prepped["epi_dtype"]
    if out_dtype is None:
        out_dtype = prepped["out_dtype"]
    h1_dim = w1.shape[1]
    h2_dim = w2.shape[1]
    w3_cols = w3.shape[1]

    if batch_tile is None:
        tb = _pick_batch_tile(B)
    else:
        tb = min(int(batch_tile), B)
    if tb < B:
        tb = _round_up(tb, 16)   # sublane-aligned for packed bf16 intermediates
    grid = (pl.cdiv(B, tb),)

    itemsize = lambda a: a.size * jnp.dtype(a.dtype).itemsize
    flops = 2 * B * (state_dim * h1_dim + h1_dim * h2_dim + h2_dim * w3_cols)
    bytes_accessed = (
        itemsize(states)
        + sum(itemsize(a) for a in (w1, b1, w2, b2, w3, b3))
        + B * act_dim * jnp.dtype(out_dtype).itemsize
    )
    cost = pl.CostEstimate(flops=int(flops), transcendentals=int(B * act_dim),
                           bytes_accessed=int(bytes_accessed))

    kernel = _make_policy_kernel(act_dim, epi_dtype)
    return pl.pallas_call(
        kernel,
        out_shape=jax.ShapeDtypeStruct((B, act_dim), out_dtype),
        grid_spec=pltpu.PrefetchScalarGridSpec(
            num_scalar_prefetch=0,
            grid=grid,
            in_specs=[
                pl.BlockSpec((tb, state_dim), lambda i: (i, 0)),       # states tile
                pl.BlockSpec((state_dim, h1_dim), lambda i: (0, 0)),   # W1 (resident)
                pl.BlockSpec((1, h1_dim), lambda i: (0, 0)),           # b1
                pl.BlockSpec((h1_dim, h2_dim), lambda i: (0, 0)),      # W2
                pl.BlockSpec((1, h2_dim), lambda i: (0, 0)),           # b2
                pl.BlockSpec((h2_dim, w3_cols), lambda i: (0, 0)),     # W3 mean head (padded)
                pl.BlockSpec((1, act_dim), lambda i: (0, 0)),          # b3 mean head
            ],
            out_specs=pl.BlockSpec((tb, act_dim), lambda i: (i, 0)),
        ),
        compiler_params=pltpu.CompilerParams(
            dimension_semantics=("parallel",),
            vmem_limit_bytes=32 * 1024 * 1024,
        ),
        cost_estimate=cost,
    )(states, w1, b1, w2, b2, w3, b3)


def init_params(key, state_dim, action_dim, hidden_units=(256, 256)):
    """Deterministic synthetic init (matches the module's layer shapes)."""
    dims = [state_dim, *hidden_units, 2 * action_dim]
    params = []
    for idx in range(len(dims) - 1):
        fan_in, fan_out = dims[idx], dims[idx + 1]
        key, wk, bk = jax.random.split(key, 3)
        bound = 1.0 / jnp.sqrt(fan_in)
        w = jax.random.uniform(wk, (fan_in, fan_out), jnp.float32, -bound, bound)
        b = jax.random.uniform(bk, (1, fan_out), jnp.float32, -bound, bound)
        params.extend([w, b])
    return tuple(params)


def _reference_forward(states, params):
    w1, b1, w2, b2, w3, b3 = params
    h1 = jnp.maximum(states @ w1 + b1, 0.0)
    h2 = jnp.maximum(h1 @ w2 + b2, 0.0)
    o = h2 @ w3 + b3
    act_dim = o.shape[-1] // 2
    return jnp.tanh(o[:, :act_dim])


# TODO(synk): sample() / evaluate_log_pi() (log_std head + reparameterization)
# are not part of forward() and are not implemented here.


if __name__ == "__main__":
    key = jax.random.PRNGKey(0)
    key, sk, pk, sk2 = jax.random.split(key, 4)

    # Small shapes consistent with the module's forward: states (B, state_dim).
    B, state_dim, action_dim = 8, 16, 4
    hidden_units = (256, 256)

    states = jax.random.normal(sk, (B, state_dim), jnp.float32)
    params = init_params(pk, state_dim, action_dim, hidden_units)
    ref = _reference_forward(states, params)

    # f32 path: exact vs reference.
    prepped_f32 = prepare_params(params, use_bf16=False)
    out_f32 = jax.block_until_ready(
        state_dependent_policy_forward(states, prepped_f32)
    )
    assert out_f32.shape == (B, action_dim), out_f32.shape
    assert jnp.allclose(out_f32, ref, atol=1e-5, rtol=1e-5), "f32 mismatch vs reference"

    # Default path: bf16 MXU inputs, generation-aware bf16/f32 epilogue, bf16
    # output.  Loose tolerance (bf16 quantization of weights/activations/output).
    prepped = prepare_params(params)
    out = jax.block_until_ready(state_dependent_policy_forward(states, prepped))
    assert out.shape == (B, action_dim), out.shape
    assert jnp.allclose(out.astype(jnp.float32), ref, atol=5e-2), "bf16 mismatch vs reference"

    # Multi-step default grid (B > 256 -> >=2 tiles, ragged last tile).
    B2 = 600
    states2 = jax.random.normal(sk2, (B2, state_dim), jnp.float32)
    ref2 = _reference_forward(states2, params)
    out2 = jax.block_until_ready(state_dependent_policy_forward(states2, prepped))
    assert out2.shape == (B2, action_dim), out2.shape
    assert jnp.allclose(out2.astype(jnp.float32), ref2, atol=5e-2), "tiled mismatch vs reference"

    # Explicit small batch_tile path (more grid steps / pipelining).
    out3 = jax.block_until_ready(
        state_dependent_policy_forward(states2, prepped, batch_tile=128)
    )
    assert out3.shape == (B2, action_dim), out3.shape
    assert jnp.allclose(out3.astype(jnp.float32), ref2, atol=5e-2), "batch_tile mismatch vs reference"

    print("KERNEL_OK")
</pallas_src>

<mosaic_0001>
module attributes {stable_mosaic.version = 11 : i64} {
  func.func @kernel(%arg0: i32, %arg1: memref<8x16xf32, #tpu.memory_space<vmem>>, %arg2: memref<16x256xf32, #tpu.memory_space<vmem>>, %arg3: memref<1x256xf32, #tpu.memory_space<vmem>>, %arg4: memref<256x256xf32, #tpu.memory_space<vmem>>, %arg5: memref<1x256xf32, #tpu.memory_space<vmem>>, %arg6: memref<256x128xf32, #tpu.memory_space<vmem>>, %arg7: memref<1x4xf32, #tpu.memory_space<vmem>>, %arg8: memref<8x4xf32, #tpu.memory_space<vmem>>) attributes {dimension_semantics = [#tpu.dimension_semantics<parallel>], iteration_bounds = array<i64: 1>, scalar_prefetch = 0 : i64, scratch_operands = 0 : i64, tpu.core_type = #tpu.core_type<tc>, window_params = [{transform_indices = @transform_0, window_bounds = array<i64: 8, 16>}, {pipeline_mode = #tpu.pipeline_mode<synchronous>, transform_indices = @transform_1, window_bounds = array<i64: 16, 256>}, {pipeline_mode = #tpu.pipeline_mode<synchronous>, transform_indices = @transform_2, window_bounds = array<i64: 1, 256>}, {pipeline_mode = #tpu.pipeline_mode<synchronous>, transform_indices = @transform_3, window_bounds = array<i64: 256, 256>}, {pipeline_mode = #tpu.pipeline_mode<synchronous>, transform_indices = @transform_4, window_bounds = array<i64: 1, 256>}, {pipeline_mode = #tpu.pipeline_mode<synchronous>, transform_indices = @transform_5, window_bounds = array<i64: 256, 128>}, {pipeline_mode = #tpu.pipeline_mode<synchronous>, transform_indices = @transform_6, window_bounds = array<i64: 1, 4>}, {transform_indices = @transform_7, window_bounds = array<i64: 8, 4>}]} {
    %c0 = arith.constant 0 : index
    %c0_0 = arith.constant 0 : index
    %0 = vector.load %arg1[%c0, %c0_0] : memref<8x16xf32, #tpu.memory_space<vmem>>, vector<8x16xf32>
    %c0_1 = arith.constant 0 : index
    %c0_2 = arith.constant 0 : index
    %1 = vector.load %arg2[%c0_1, %c0_2] : memref<16x256xf32, #tpu.memory_space<vmem>>, vector<16x256xf32>
    %cst = arith.constant dense<0.000000e+00> : vector<8x256xf32>
    %2 = tpu.matmul %0, %1, %cst {dimension_numbers = #tpu.dot_dimension_numbers<[1], [0], [0], [1], [0, 0, 1, 1], [], []>} : vector<8x16xf32>, vector<16x256xf32>, vector<8x256xf32> -> vector<8x256xf32>
    %c0_3 = arith.constant 0 : index
    %c0_4 = arith.constant 0 : index
    %3 = vector.load %arg3[%c0_3, %c0_4] : memref<1x256xf32, #tpu.memory_space<vmem>>, vector<1x256xf32>
    %4 = vector.broadcast %3 : vector<1x256xf32> to vector<8x256xf32>
    %5 = arith.addf %2, %4 : vector<8x256xf32>
    %cst_5 = arith.constant 0.000000e+00 : f32
    %6 = vector.broadcast %cst_5 : f32 to vector<8x256xf32>
    %7 = arith.maximumf %5, %6 : vector<8x256xf32>
    %c0_6 = arith.constant 0 : index
    %c0_7 = arith.constant 0 : index
    %8 = vector.load %arg4[%c0_6, %c0_7] : memref<256x256xf32, #tpu.memory_space<vmem>>, vector<256x256xf32>
    %cst_8 = arith.constant dense<0.000000e+00> : vector<8x256xf32>
    %9 = tpu.matmul %7, %8, %cst_8 {dimension_numbers = #tpu.dot_dimension_numbers<[1], [0], [0], [1], [0, 0, 1, 1], [], []>} : vector<8x256xf32>, vector<256x256xf32>, vector<8x256xf32> -> vector<8x256xf32>
    %c0_9 = arith.constant 0 : index
    %c0_10 = arith.constant 0 : index
    %10 = vector.load %arg5[%c0_9, %c0_10] : memref<1x256xf32, #tpu.memory_space<vmem>>, vector<1x256xf32>
    %11 = vector.broadcast %10 : vector<1x256xf32> to vector<8x256xf32>
    %12 = arith.addf %9, %11 : vector<8x256xf32>
    %cst_11 = arith.constant 0.000000e+00 : f32
    %13 = vector.broadcast %cst_11 : f32 to vector<8x256xf32>
    %14 = arith.maximumf %12, %13 : vector<8x256xf32>
    %c0_12 = arith.constant 0 : index
    %c0_13 = arith.constant 0 : index
    %15 = vector.load %arg6[%c0_12, %c0_13] : memref<256x128xf32, #tpu.memory_space<vmem>>, vector<256x128xf32>
    %cst_14 = arith.constant dense<0.000000e+00> : vector<8x128xf32>
    %16 = tpu.matmul %14, %15, %cst_14 {dimension_numbers = #tpu.dot_dimension_numbers<[1], [0], [0], [1], [0, 0, 1, 1], [], []>} : vector<8x256xf32>, vector<256x128xf32>, vector<8x128xf32> -> vector<8x128xf32>
    %17 = vector.extract_strided_slice %16 {offsets = [0, 0], sizes = [8, 4], strides = [1, 1]} : vector<8x128xf32> to vector<8x4xf32>
    %c0_15 = arith.constant 0 : index
    %c0_16 = arith.constant 0 : index
    %18 = vector.load %arg7[%c0_15, %c0_16] : memref<1x4xf32, #tpu.memory_space<vmem>>, vector<1x4xf32>
    %19 = vector.broadcast %18 : vector<1x4xf32> to vector<8x4xf32>
    %20 = arith.addf %17, %19 : vector<8x4xf32>
    %21 = math.tanh %20 : vector<8x4xf32>
    %c0_17 = arith.constant 0 : index
    %c0_18 = arith.constant 0 : index
    %22 = vector.load %arg8[%c0_17, %c0_18] : memref<8x4xf32, #tpu.memory_space<vmem>>, vector<8x4xf32>
    tpu.vector_store %arg8[%c0_17, %c0_18], %21 {strides = array<i32>} : memref<8x4xf32, #tpu.memory_space<vmem>>, vector<8x4xf32>,
    return
  }
  func.func @transform_0(%arg0: i32) -> (i32, i32) {
    %c0_i32 = arith.constant 0 : i32
    %c0_i32_0 = arith.constant 0 : i32
    return %arg0, %c0_i32 : i32, i32
  }
  func.func @transform_1(%arg0: i32) -> (i32, i32) {
    %c0_i32 = arith.constant 0 : i32
    %c0_i32_0 = arith.constant 0 : i32
    %c0_i32_1 = arith.constant 0 : i32
    return %c0_i32, %c0_i32_0 : i32, i32
  }
  func.func @transform_2(%arg0: i32) -> (i32, i32) {
    %c0_i32 = arith.constant 0 : i32
    %c0_i32_0 = arith.constant 0 : i32
    %c0_i32_1 = arith.constant 0 : i32
    return %c0_i32, %c0_i32_0 : i32, i32
  }
  func.func @transform_3(%arg0: i32) -> (i32, i32) {
    %c0_i32 = arith.constant 0 : i32
    %c0_i32_0 = arith.constant 0 : i32
    %c0_i32_1 = arith.constant 0 : i32
    return %c0_i32, %c0_i32_0 : i32, i32
  }
  func.func @transform_4(%arg0: i32) -> (i32, i32) {
    %c0_i32 = arith.constant 0 : i32
    %c0_i32_0 = arith.constant 0 : i32
    %c0_i32_1 = arith.constant 0 : i32
    return %c0_i32, %c0_i32_0 : i32, i32
  }
  func.func @transform_5(%arg0: i32) -> (i32, i32) {
    %c0_i32 = arith.constant 0 : i32
    %c0_i32_0 = arith.constant 0 : i32
    %c0_i32_1 = arith.constant 0 : i32
    return %c0_i32, %c0_i32_0 : i32, i32
  }
  func.func @transform_6(%arg0: i32) -> (i32, i32) {
    %c0_i32 = arith.constant 0 : i32
    %c0_i32_0 = arith.constant 0 : i32
    %c0_i32_1 = arith.constant 0 : i32
    return %c0_i32, %c0_i32_0 : i32, i32
  }
  func.func @transform_7(%arg0: i32) -> (i32, i32) {
    %c0_i32 = arith.constant 0 : i32
    %c0_i32_0 = arith.constant 0 : i32
    return %arg0, %c0_i32 : i32, i32
  }
}

</mosaic_0001>

<bundles_post_ra>
// kernel: tpu_custom_call.1
= control target key start
LH: loop header
LB: loop body
LE: loop exit
PB: predicated region body
PF: predicated region fallthrough
CT: control target
= control target key end

     0   :  { %12 = vsyncpa [#allocation3], 0  ;;  %s799_s0 = inlined_call_operand.hbm [shape: f32[8,16], index: 0, kind: input, shape index: {}]   ;;  %s800_s1 = inlined_call_operand.hbm [shape: f32[16,256], index: 1, kind: input, shape index: {}]   ;;  %s801_s2 = inlined_call_operand.vmem [shape: f32[1,256], index: 2, kind: input, shape index: {}]   ;;  %s802_s3 = inlined_call_operand.hbm [shape: f32[256,256], index: 3, kind: input, shape index: {}]   ;;  %s803_s4 = inlined_call_operand.vmem [shape: f32[1,256], index: 4, kind: input, shape index: {}]   ;;  %s804_s5 = inlined_call_operand.hbm [shape: f32[256,128], index: 5, kind: input, shape index: {}]   ;;  %s805_s6 = inlined_call_operand.vmem [shape: f32[1,4], index: 6, kind: input, shape index: {}]   ;;  %s806_s7 = inlined_call_operand.vmem [shape: f32[8,4], index: 7, kind: output, shape index: {}]  }
   0x1   :  { %13 = vsyncpa [#allocation5], 0 }
   0x2   :  { %14 = vsyncpa [#allocation8], 0  ;;  %s684_s24 = smov [#allocation4]   ;;  %s590_s28 = scalar_lea.hbm %s800_s1, 512 }
   0x3   :  { %s30_s25 = sshll.u32 %s684_s24, 4  ;;  %p591_p0 = scmp.ne.s32.totalorder %s800_s1, %s590_s28  ;;  %s31_s25 = int_to_ptr.vmem [resolvable:$true] %s30_s25 }
   0x4   :  { %p594_p1 = scmp.lt.u32.totalorder %s590_s28, %s800_s1 }
   0x6   :  { %p596_p2 = pnand %p594_p1, %p591_p0 }
   0x8   :  { %599 = shalt.err (!%p596_p2)
}
   0x9   :  { %s600_s10 = scalar_lea.vmem %s31_s25, 512  ;;  %p605_p4 = scmp.lt.s32.totalorder %s31_s25, %s31_s25 }
   0xa   :  { %p601_p3 = scmp.ne.s32.totalorder %s31_s25, %s600_s10  ;;  %p606_p5 = scmp.lt.s32.totalorder %s600_s10, %s600_s10 }
   0xc   :  { %p607_p6 = por %p606_p5, %p605_p4 }
   0xe   :  { %p608_p7 = pnand %p607_p6, %p601_p3 }
  0x10   :  { %611 = shalt.err (!%p608_p7)
}
  0x11   :  { %s685_s11 = smov 256   ;;  %s686_s12 = smov 16  }
  0x12   :  { %36 = dma.hbm_to_vmem [thread:$0]  %s800_s1, 512, %s31_s25, [#allocation5], %s685_s11, %s685_s11, %s686_s12  }
  0x13   :  { %s687_s15 = smov [#allocation2]   ;;  %s688_s17 = smov [#allocation6]  }
  0x14   :  { %s21_s16 = sshll.u32 %s687_s15, 4  ;;  %s44_s18 = sshll.u32 %s688_s17, 4  ;;  %s22_s16 = int_to_ptr.vmem [resolvable:$true] %s21_s16  ;;  %s45_s18 = int_to_ptr.vmem [resolvable:$true] %s44_s18 }
  0x15   :  { %s612_s21 = scalar_lea.hbm %s799_s0, 128 }
  0x16   :  { %p613_p8 = scmp.ne.s32.totalorder %s799_s0, %s612_s21  ;;  %p616_p9 = scmp.lt.u32.totalorder %s612_s21, %s799_s0 }
  0x18   :  { %p618_p10 = pnand %p616_p9, %p613_p8 }
  0x1a   :  { %621 = shalt.err (!%p618_p10)
}
  0x1b   :  { %s622_s1 = scalar_lea.vmem %s22_s16, 128  ;;  %p627_p12 = scmp.lt.s32.totalorder %s22_s16, %s22_s16 }
  0x1c   :  { %p623_p11 = scmp.ne.s32.totalorder %s22_s16, %s622_s1  ;;  %p628_p13 = scmp.lt.s32.totalorder %s622_s1, %s622_s1 }
  0x1e   :  { %p629_p0 = por %p628_p13, %p627_p12 }
  0x20   :  { %p630_p1 = pnand %p629_p0, %p623_p11 }
  0x22   :  { %633 = shalt.err (!%p630_p1)
}
  0x23   :  { %24 = dma.hbm_to_vmem [thread:$0]  %s799_s0, 128, %s22_s16, [#allocation3]  }
  0x24   :  { %s634_s30 = scalar_lea.hbm %s802_s3, 8192 }
  0x25   :  { %p635_p2 = scmp.ne.s32.totalorder %s802_s3, %s634_s30  ;;  %p638_p3 = scmp.lt.u32.totalorder %s634_s30, %s802_s3 }
  0x27   :  { %p640_p4 = pnand %p638_p3, %p635_p2 }
  0x29   :  { %643 = shalt.err (!%p640_p4)
}
  0x2a   :  { %s644_s14 = scalar_lea.vmem %s45_s18, 8192  ;;  %p649_p6 = scmp.lt.s32.totalorder %s45_s18, %s45_s18 }
  0x2b   :  { %p645_p5 = scmp.ne.s32.totalorder %s45_s18, %s644_s14  ;;  %p650_p7 = scmp.lt.s32.totalorder %s644_s14, %s644_s14 }
  0x2d   :  { %p651_p8 = por %p650_p7, %p649_p6 }
  0x2f   :  { %p652_p9 = pnand %p651_p8, %p645_p5 }
  0x31   :  { %655 = shalt.err (!%p652_p9)
}
  0x32   :  { %50 = dma.hbm_to_vmem [thread:$0]  %s802_s3, 8192, %s45_s18, [#allocation5], %s685_s11, %s685_s11, %s686_s12  }
  0x33   :  { %s689_s16 = smov [#allocation7]   ;;  %s656_s21 = scalar_lea.hbm %s804_s5, 4096 }
  0x34   :  { %s58_s17 = sshll.u32 %s689_s16, 4  ;;  %p657_p10 = scmp.ne.s32.totalorder %s804_s5, %s656_s21  ;;  %s59_s17 = int_to_ptr.vmem [resolvable:$true] %s58_s17 }
  0x35   :  { %p660_p11 = scmp.lt.u32.totalorder %s656_s21, %s804_s5 }
  0x37   :  { %p662_p12 = pnand %p660_p11, %p657_p10 }
  0x39   :  { %665 = shalt.err (!%p662_p12)
}
  0x3a   :  { %s666_s1 = scalar_lea.vmem %s59_s17, 4096  ;;  %p671_p0 = scmp.lt.s32.totalorder %s59_s17, %s59_s17 }
  0x3b   :  { %p667_p13 = scmp.ne.s32.totalorder %s59_s17, %s666_s1  ;;  %p672_p1 = scmp.lt.s32.totalorder %s666_s1, %s666_s1 }
  0x3d   :  { %p673_p2 = por %p672_p1, %p671_p0 }
  0x3f   :  { %p674_p3 = pnand %p673_p2, %p667_p13 }
  0x41   :  { %677 = shalt.err (!%p674_p3)
}
  0x42   :  { %s690_s3 = smov 128   ;;  %s691_s11 = smov 8  }
  0x43   :  { %64 = dma.hbm_to_vmem [thread:$0]  %s804_s5, 4096, %s59_s17, [#allocation8], %s690_s3, %s690_s3, %s691_s11  }
  0x44   :  { %678 = dma.done.wait [#allocation3], 128  }
  0x45   :  { %679 = vsyncadd [#allocation3], 4294967168 }
  0x46   :  { %680 = dma.done.wait [#allocation5], 8704  }
  0x47   :  { %681 = vsyncadd [#allocation5], 4294958592 }
  0x48   :  { %682 = dma.done.wait [#allocation8], 4096  }
  0x49   :  { %683 = vsyncadd [#allocation8], 4294963200  ;;  %v692_v0 = vmov 0.0   ;;  %v81_v1 = vld [vmem:[#allocation4 + $0x8] sm:$0xff]  ;;  %v83_v2 = vld [vmem:[#allocation4 + $0x18] sm:$0xff]  ;;  %vm96_vm0 = vcmask 130048  }
  0x4a   :  { %164 = vmatprep.mubr.f32.mxu0 %v692_v0  ;;  %v80_v3 = vld [vmem:[#allocation4] sm:$0xff]  ;;  %v479_v4 = vpack.c.bf16 %v83_v2, %v81_v1  ;;  %v82_v5 = vld [vmem:[#allocation4 + $0x10] sm:$0xff]  ;;  %v174_v6 = vld [vmem:[#allocation6 + $0x8] sm:$0xff]  ;;  %vm433_vm1 = vcmask 31744  }
  0x4b   :  { %v481_v7 = vpack.c.bf16 %v82_v5, %v80_v3  ;;  %v79_v8 = vld [vmem:[#allocation2] sm:$0xff]  ;;  %v173_v10 = vld [vmem:[#allocation6] sm:$0xff]  ;;  %v175_v11 = vld [vmem:[#allocation6 + $0x10] sm:$0xff] }
  0x4c   :  { %v176_v9 = vld [vmem:[#allocation6 + $0x18] sm:$0xff]  ;;  %480 = vmatprep.subr.bf16.mxu0 %v479_v4  ;;  %v485_v13 = vpack.c.bf16 %v175_v11, %v173_v10  ;;  %v178_v14 = vld [vmem:[#allocation6 + $0x28] sm:$0xff]  ;;  %v177_v16 = vld [vmem:[#allocation6 + $0x20] sm:$0xff] }
  0x4d   :  { %v483_v12 = vpack.c.bf16 %v176_v9, %v174_v6  ;;  %v180_v15 = vld [vmem:[#allocation6 + $0x38] sm:$0xff]  ;;  %482 = vmatpush1.bf16.msra.mxu0 %v481_v7  ;;  %v179_v18 = vld [vmem:[#allocation6 + $0x30] sm:$0xff]  ;;  %v182_v19 = vld [vmem:[#allocation6 + $0x48] sm:$0xff] }
  0x4e   :  { %v487_v17 = vpack.c.bf16 %v180_v15, %v178_v14  ;;  %v184_v20 = vld [vmem:[#allocation6 + $0x58] sm:$0xff]  ;;  %v489_v21 = vpack.c.bf16 %v179_v18, %v177_v16  ;;  %v181_v23 = vld [vmem:[#allocation6 + $0x40] sm:$0xff]  ;;  %v183_v24 = vld [vmem:[#allocation6 + $0x50] sm:$0xff] }
  0x4f   :  { %484 = vmatprep.subr.bf16.mxu1 %v483_v12  ;;  %v491_v22 = vpack.c.bf16 %v184_v20, %v182_v19  ;;  %v186_v25 = vld [vmem:[#allocation6 + $0x68] sm:$0xff]  ;;  %v188_v26 = vld [vmem:[#allocation6 + $0x78] sm:$0xff]  ;;  %v493_v27 = vpack.c.bf16 %v183_v24, %v181_v23  ;;  %v185_v29 = vld [vmem:[#allocation6 + $0x60] sm:$0xff] }
  0x50   :  { %486 = vmatpush1.bf16.msra.mxu1 %v485_v13  ;;  %442 = vmatmul.mubr.msk.f32.vlgmr.msra.gmra.mrb[0].mxu0 %vm96_vm0, %v79_v8  ;;  %v495_v28 = vpack.c.bf16 %v188_v26, %v186_v25  ;;  %v187_v30 = vld [vmem:[#allocation6 + $0x70] sm:$0xff]  ;;  %v190_v31 = vld [vmem:[#allocation6 + $0x88] sm:$0xff]  ;;  %v192_v32 = vld [vmem:[#allocation6 + $0x98] sm:$0xff] }
  0x51   :  { %488 = vmatprep.subr.bf16.mxu1 %v487_v17  ;;  %v497_v33 = vpack.c.bf16 %v187_v30, %v185_v29  ;;  %v499_v34 = vpack.c.bf16 %v192_v32, %v190_v31  ;;  %v189_v35 = vld [vmem:[#allocation6 + $0x80] sm:$0xff]  ;;  %v191_v36 = vld [vmem:[#allocation6 + $0x90] sm:$0xff]  ;;  %v194_v37 = vld [vmem:[#allocation6 + $0xa8] sm:$0xff] }
  0x52   :  { %v196_v38 = vld [vmem:[#allocation6 + $0xb8] sm:$0xff]  ;;  %v501_v39 = vpack.c.bf16 %v191_v36, %v189_v35  ;;  %v193_v41 = vld [vmem:[#allocation6 + $0xa0] sm:$0xff]  ;;  %v195_v42 = vld [vmem:[#allocation6 + $0xb0] sm:$0xff] }
  0x53   :  { %v503_v40 = vpack.c.bf16 %v196_v38, %v194_v37  ;;  %v198_v43 = vld [vmem:[#allocation6 + $0xc8] sm:$0xff]  ;;  %v200_v44 = vld [vmem:[#allocation6 + $0xd8] sm:$0xff]  ;;  %v505_v45 = vpack.c.bf16 %v195_v42, %v193_v41  ;;  %v197_v47 = vld [vmem:[#allocation6 + $0xc0] sm:$0xff] }
  0x54   :  { %490 = vmatpush1.bf16.msra.mxu1 %v489_v21  ;;  %v507_v46 = vpack.c.bf16 %v200_v44, %v198_v43  ;;  %v199_v48 = vld [vmem:[#allocation6 + $0xd0] sm:$0xff]  ;;  %v202_v49 = vld [vmem:[#allocation6 + $0xe8] sm:$0xff]  ;;  %v204_v50 = vld [vmem:[#allocation6 + $0xf8] sm:$0xff] }
  0x55   :  { %492 = vmatprep.subr.bf16.mxu1 %v491_v22  ;;  %v509_v51 = vpack.c.bf16 %v199_v48, %v197_v47  ;;  %v511_v52 = vpack.c.bf16 %v204_v50, %v202_v49  ;;  %v201_v53 = vld [vmem:[#allocation6 + $0xe0] sm:$0xff]  ;;  %v203_v54 = vld [vmem:[#allocation6 + $0xf0] sm:$0xff]  ;;  %v206_v55 = vld [vmem:[#allocation6 + $0x108] sm:$0xff] }
  0x56   :  { %v208_v56 = vld [vmem:[#allocation6 + $0x118] sm:$0xff]  ;;  %v513_v57 = vpack.c.bf16 %v203_v54, %v201_v53  ;;  %v205_v59 = vld [vmem:[#allocation6 + $0x100] sm:$0xff]  ;;  %v207_v60 = vld [vmem:[#allocation6 + $0x110] sm:$0xff] }
  0x57   :  { %v515_v58 = vpack.c.bf16 %v208_v56, %v206_v55  ;;  %v210_v61 = vld [vmem:[#allocation6 + $0x128] sm:$0xff]  ;;  %v212_v62 = vld [vmem:[#allocation6 + $0x138] sm:$0xff]  ;;  %v517_v63 = vpack.c.bf16 %v207_v60, %v205_v59  ;;  %v209_v1 = vld [vmem:[#allocation6 + $0x120] sm:$0xff] }
  0x58   :  { %494 = vmatpush1.bf16.msra.mxu1 %v493_v27  ;;  %v519_v0 = vpack.c.bf16 %v212_v62, %v210_v61  ;;  %v211_v2 = vld [vmem:[#allocation6 + $0x130] sm:$0xff]  ;;  %v214_v3 = vld [vmem:[#allocation6 + $0x148] sm:$0xff]  ;;  %v216_v4 = vld [vmem:[#allocation6 + $0x158] sm:$0xff] }
  0x59   :  { %496 = vmatprep.subr.bf16.mxu1 %v495_v28  ;;  %v521_v5 = vpack.c.bf16 %v211_v2, %v209_v1  ;;  %v523_v6 = vpack.c.bf16 %v216_v4, %v214_v3  ;;  %v213_v7 = vld [vmem:[#allocation6 + $0x140] sm:$0xff]  ;;  %v215_v8 = vld [vmem:[#allocation6 + $0x150] sm:$0xff]  ;;  %v218_v9 = vld [vmem:[#allocation6 + $0x168] sm:$0xff] }
  0x5a   :  { %v220_v10 = vld [vmem:[#allocation6 + $0x178] sm:$0xff]  ;;  %v525_v11 = vpack.c.bf16 %v215_v8, %v213_v7  ;;  %v217_v13 = vld [vmem:[#allocation6 + $0x160] sm:$0xff]  ;;  %v219_v14 = vld [vmem:[#allocation6 + $0x170] sm:$0xff] }
  0x5b   :  { %v527_v12 = vpack.c.bf16 %v220_v10, %v218_v9  ;;  %v222_v15 = vld [vmem:[#allocation6 + $0x188] sm:$0xff]  ;;  %v224_v16 = vld [vmem:[#allocation6 + $0x198] sm:$0xff]  ;;  %v529_v17 = vpack.c.bf16 %v219_v14, %v217_v13  ;;  %v221_v19 = vld [vmem:[#allocation6 + $0x180] sm:$0xff] }
  0x5c   :  { %498 = vmatpush1.bf16.msra.mxu1 %v497_v33  ;;  %v531_v18 = vpack.c.bf16 %v224_v16, %v222_v15  ;;  %v223_v20 = vld [vmem:[#allocation6 + $0x190] sm:$0xff]  ;;  %v226_v21 = vld [vmem:[#allocation6 + $0x1a8] sm:$0xff]  ;;  %v228_v22 = vld [vmem:[#allocation6 + $0x1b8] sm:$0xff]  ;;  %v86_v15 = vlaneseq }
  0x5d   :  { %500 = vmatprep.subr.bf16.mxu1 %v499_v34  ;;  %v533_v23 = vpack.c.bf16 %v223_v20, %v221_v19  ;;  %v535_v24 = vpack.c.bf16 %v228_v22, %v226_v21  ;;  %v225_v25 = vld [vmem:[#allocation6 + $0x1a0] sm:$0xff]  ;;  %v227_v26 = vld [vmem:[#allocation6 + $0x1b0] sm:$0xff]  ;;  %v230_v27 = vld [vmem:[#allocation6 + $0x1c8] sm:$0xff] }
  0x5e   :  { %v232_v28 = vld [vmem:[#allocation6 + $0x1d8] sm:$0xff]  ;;  %v537_v29 = vpack.c.bf16 %v227_v26, %v225_v25  ;;  %v229_v31 = vld [vmem:[#allocation6 + $0x1c0] sm:$0xff]  ;;  %v231_v32 = vld [vmem:[#allocation6 + $0x1d0] sm:$0xff]  ;;  %v87_v16 = vshrl.u32 %v86_v15, 7 }
  0x5f   :  { %v539_v30 = vpack.c.bf16 %v232_v28, %v230_v27  ;;  %v541_v33 = vpack.c.bf16 %v231_v32, %v229_v31  ;;  %v234_v34 = vld [vmem:[#allocation6 + $0x1e8] sm:$0xff]  ;;  %v236_v35 = vld [vmem:[#allocation6 + $0x1f8] sm:$0xff]  ;;  %v233_v37 = vld [vmem:[#allocation6 + $0x1e0] sm:$0xff] }
  0x60   :  { %502 = vmatpush1.bf16.msra.mxu1 %v501_v39  ;;  %v543_v36 = vpack.c.bf16 %v236_v35, %v234_v34  ;;  %v235_v38 = vld [vmem:[#allocation6 + $0x1f0] sm:$0xff]  ;;  %v339_v41 = vld [vmem:[#allocation7 + $0x88] sm:$0xff]  ;;  %v322_v42 = vld [vmem:[#allocation7] sm:$0xff]  ;;  %v92_v19 = vsub.s32 1, %v87_v16 }
  0x61   :  { %504 = vmatprep.subr.bf16.mxu1 %v503_v40  ;;  %v545_v39 = vpack.c.bf16 %v235_v38, %v233_v37  ;;  %v338_v40 = vld [vmem:[#allocation7 + $0x80] sm:$0xff]  ;;  %v323_v44 = vld [vmem:[#allocation7 + $0x8] sm:$0xff]  ;;  %v324_v49 = vld [vmem:[#allocation7 + $0x10] sm:$0xff] }
  0x62   :  { %v547_v43 = vpack.c.bf16 %v339_v41, %v338_v40  ;;  %v549_v47 = vpack.c.bf16 %v323_v44, %v322_v42  ;;  %v325_v50 = vld [vmem:[#allocation7 + $0x18] sm:$0xff]  ;;  %v326_v55 = vld [vmem:[#allocation7 + $0x20] sm:$0xff]  ;;  %v327_v56 = vld [vmem:[#allocation7 + $0x28] sm:$0xff] }
  0x63   :  { %v553_v53 = vpack.c.bf16 %v325_v50, %v324_v49  ;;  %v557_v59 = vpack.c.bf16 %v327_v56, %v326_v55  ;;  %v328_v61 = vld [vmem:[#allocation7 + $0x30] sm:$0xff]  ;;  %v329_v62 = vld [vmem:[#allocation7 + $0x38] sm:$0xff]  ;;  %v330_v3 = vld [vmem:[#allocation7 + $0x40] sm:$0xff] }
  0x64   :  { %506 = vmatpush1.bf16.msra.mxu1 %v505_v45  ;;  %v340_v45 = vld [vmem:[#allocation7 + $0x90] sm:$0xff]  ;;  %548 = vmatprep.subr.bf16.mxu0 %v547_v43  ;;  %v561_v1 = vpack.c.bf16 %v329_v62, %v328_v61  ;;  %v331_v4 = vld [vmem:[#allocation7 + $0x48] sm:$0xff]  ;;  %v333_v10 = vld [vmem:[#allocation7 + $0x58] sm:$0xff] }
  0x65   :  { %508 = vmatprep.subr.bf16.mxu1 %v507_v46  ;;  %v341_v46 = vld [vmem:[#allocation7 + $0x98] sm:$0xff]  ;;  %550 = vmatpush3.bf16.msra.mxu0 %v549_v47  ;;  %v565_v7 = vpack.c.bf16 %v331_v4, %v330_v3  ;;  %v332_v9 = vld [vmem:[#allocation7 + $0x50] sm:$0xff]  ;;  %v334_v28 = vld [vmem:[#allocation7 + $0x60] sm:$0xff] }
  0x66   :  { %v551_v48 = vpack.c.bf16 %v341_v46, %v340_v45  ;;  %v569_v13 = vpack.c.bf16 %v333_v10, %v332_v9  ;;  %v352_v31 = vld [vmem:[#allocation7 + $0xf0] sm:$0xff]  ;;  %v353_v32 = vld [vmem:[#allocation7 + $0xf8] sm:$0xff] }
  0x67   :  { %v336_v34 = vld [vmem:[#allocation7 + $0x70] sm:$0xff]  ;;  %v337_v35 = vld [vmem:[#allocation7 + $0x78] sm:$0xff] }
  0x68   :  { %510 = vmatpush1.bf16.msra.mxu1 %v509_v51  ;;  %v342_v51 = vld [vmem:[#allocation7 + $0xa0] sm:$0xff]  ;;  %552 = vmatprep.subr.bf16.mxu0 %v551_v48  ;;  %v237_v37 = vld [vmem:[%s803_s4] sm:$0x3] }
  0x69   :  { %512 = vmatprep.subr.bf16.mxu1 %v511_v52  ;;  %v343_v52 = vld [vmem:[#allocation7 + $0xa8] sm:$0xff]  ;;  %554 = vmatpush3.bf16.msra.mxu0 %v553_v53  ;;  %v443_v48 = vld [vmem:[%s805_s6] ss:$0 sm:$0xff] }
  0x6a   :  { %v555_v54 = vpack.c.bf16 %v343_v52, %v342_v51 }
  0x6c   :  { %514 = vmatpush1.bf16.msra.mxu1 %v513_v57  ;;  %v344_v57 = vld [vmem:[#allocation7 + $0xb0] sm:$0xff]  ;;  %556 = vmatprep.subr.bf16.mxu0 %v555_v54 }
  0x6d   :  { %516 = vmatprep.subr.bf16.mxu1 %v515_v58  ;;  %v345_v58 = vld [vmem:[#allocation7 + $0xb8] sm:$0xff]  ;;  %558 = vmatpush3.bf16.msra.mxu0 %v557_v59 }
  0x6e   :  { %v559_v60 = vpack.c.bf16 %v345_v58, %v344_v57 }
  0x70   :  { %518 = vmatpush1.bf16.msra.mxu1 %v517_v63  ;;  %v346_v63 = vld [vmem:[#allocation7 + $0xc0] sm:$0xff]  ;;  %560 = vmatprep.subr.bf16.mxu0 %v559_v60 }
  0x71   :  { %520 = vmatprep.subr.bf16.mxu1 %v519_v0  ;;  %v347_v0 = vld [vmem:[#allocation7 + $0xc8] sm:$0xff]  ;;  %562 = vmatpush3.bf16.msra.mxu0 %v561_v1 }
  0x72   :  { %v563_v2 = vpack.c.bf16 %v347_v0, %v346_v63 }
  0x74   :  { %522 = vmatpush1.bf16.msra.mxu1 %v521_v5  ;;  %v348_v5 = vld [vmem:[#allocation7 + $0xd0] sm:$0xff]  ;;  %564 = vmatprep.subr.bf16.mxu0 %v563_v2 }
  0x75   :  { %524 = vmatprep.subr.bf16.mxu1 %v523_v6  ;;  %v349_v6 = vld [vmem:[#allocation7 + $0xd8] sm:$0xff]  ;;  %566 = vmatpush3.bf16.msra.mxu0 %v565_v7 }
  0x76   :  { %v567_v8 = vpack.c.bf16 %v349_v6, %v348_v5 }
  0x78   :  { %526 = vmatpush1.bf16.msra.mxu1 %v525_v11  ;;  %v350_v11 = vld [vmem:[#allocation7 + $0xe0] sm:$0xff]  ;;  %568 = vmatprep.subr.bf16.mxu0 %v567_v8 }
  0x79   :  { %528 = vmatprep.subr.bf16.mxu1 %v527_v12  ;;  %v351_v12 = vld [vmem:[#allocation7 + $0xe8] sm:$0xff]  ;;  %570 = vmatpush3.bf16.msra.mxu0 %v569_v13 }
  0x7a   :  { %v571_v14 = vpack.c.bf16 %v351_v12, %v350_v11 }
  0x7c   :  { %530 = vmatpush1.bf16.msra.mxu1 %v529_v17  ;;  %572 = vmatprep.subr.bf16.mxu0 %v571_v14  ;;  %v88_v17 = vsub.s32 0, %v87_v16 }
  0x7d   :  { %532 = vmatprep.subr.bf16.mxu1 %v531_v18  ;;  %v84_v18 = vld [vmem:[%s801_s2] sm:$0x3] }
  0x7e   :  { %v89_v20 = vrot.slane %v84_v18, %v88_v17  ;;  %v93_v21 = vrot.slane %v84_v18, %v92_v19  ;;  %v242_v38 = vrot.slane %v237_v37, %v88_v17 }
  0x80   :  { %534 = vmatpush1.bf16.msra.mxu1 %v533_v23 }
  0x81   :  { %536 = vmatprep.subr.bf16.mxu1 %v535_v24 }
  0x84   :  { %538 = vmatpush1.bf16.msra.mxu1 %v537_v29  ;;  %v335_v29 = vld [vmem:[#allocation7 + $0x68] sm:$0xff] }
  0x85   :  { %540 = vmatprep.subr.bf16.mxu1 %v539_v30  ;;  %v573_v30 = vpack.c.bf16 %v335_v29, %v334_v28 }
  0x87   :  { %574 = vmatpush3.bf16.msra.mxu0 %v573_v30 }
  0x88   :  { %542 = vmatpush1.bf16.msra.mxu1 %v541_v33  ;;  %v575_v33 = vpack.c.bf16 %v353_v32, %v352_v31 }
  0x89   :  { %544 = vmatprep.subr.bf16.mxu1 %v543_v36  ;;  %v577_v36 = vpack.c.bf16 %v337_v35, %v336_v34 }
  0x8a   :  { %576 = vmatprep.subr.bf16.mxu0 %v575_v33 }
  0x8b   :  { %578 = vmatpush3.bf16.msra.mxu0 %v577_v36 }
  0x8c   :  { %546 = vmatpush1.bf16.msra.mxu1 %v545_v39  ;;  %v246_v39 = vrot.slane %v237_v37, %v92_v19 }
 0x123   :  { %v166_v22 = vpop.f32.mrb[0].mxu0 }
 0x124   :  { %v167_v23 = vadd.f32 %v166_v22, %v89_v20  ;;  %v168_v24 = vpop.f32.mrb[1].mxu0 }
 0x125   :  { %v169_v25 = vadd.f32 %v168_v24, %v93_v21 }
 0x126   :  { %v171_v27 = vmax.f32 %v167_v23, 0.0 }
 0x127   :  { %v172_v26 = vmax.f32 %v169_v25, 0.0 }
 0x129   :  { %313 = vmatprep.mubr.f32.mxu1 %v172_v26 }
 0x12a   :  { %314 = vmatmul.mubr.f32.vlgmr.msra.gmra.mrb[0].mxu1 %v171_v27 }
 0x1fd   :  { %v315_v40 = vpop.f32.mrb[0].mxu1 }
 0x1fe   :  { %v316_v41 = vadd.f32 %v315_v40, %v242_v38  ;;  %v317_v42 = vpop.f32.mrb[1].mxu1 }
 0x1ff   :  { %v318_v43 = vadd.f32 %v317_v42, %v246_v39 }
 0x200   :  { %v320_v45 = vmax.f32 %v316_v41, 0.0 }
 0x201   :  { %v321_v44 = vmax.f32 %v318_v43, 0.0 }
 0x203   :  { %418 = vmatprep.mubr.f32.mxu0 %v321_v44 }
 0x204   :  { %419 = vmatmul.mubr.f32.vlgmr.msra.gmra.mrb[2].mxu0 %v320_v45 }
 0x2d7   :  { %v476_v46 = vpop.f32.mrb[2].mxu0 }
 0x2d8   :  { %v477_v47 = vpop.f32.mrb[3].mxu0 }
 0x2d9   :  { %v478_v49 = vadd.f32 %v477_v47, %v476_v46 }
 0x2db   :  { %v431_v50 = vadd.f32 %v478_v49, %v443_v48 }
 0x2dd   :  { %588 = vtanh.f32 %v431_v50 }
 0x2e7   :  { %v589_v51 = vpop.eup %588 }
 0x2e8   :  { %434 = vst.msk [vmem:[%s806_s7] sm:$0xff] %vm433_vm1, %v589_v51 }
 0x2e9   :  { %439 = vsyncpa [#allocation3], 1 }
 0x2ea   :  { %440 = vsyncpa [#allocation5], 1 }
 0x2eb   :  { %441 = vsyncpa [#allocation8], 1 }

</bundles_post_ra>
